<compile_context>
chip_gen: v7x
topology: tpu7x:2x2x1
jax: 0.10.0
libtpu: 0.0.40
codegen_flags: <defaults>
</compile_context>

<pallas_src>
import functools

import jax
import jax.numpy as jnp
from jax import lax
from jax.experimental import pallas as pl
from jax.experimental.pallas import tpu as pltpu


def _round_up(x, m):
    return ((x + m - 1) // m) * m


def _make_cnn_kernel(TB, S_k, max_fs, E, K, D):
    """Kernel factory.  All shape parameters are static Python ints."""

    def kernel(emb_ref, w_ref, b_ref, mask_ref, out_ref):
        # emb_ref  : (TB, S_pad, E) bf16 embedded tokens (seq zero-padded)
        # w_ref    : (4, D, D) bf16 packed [conv | fc1 (BN folded) | fc2 | fc3]
        # b_ref    : (4, D)    f32  packed biases
        # mask_ref : (S_k, D)  f32  1.0 where a conv position is valid
        # out_ref  : (TB, D)   f32  logits in cols [0, output_dim), zeros after
        emb = emb_ref[...]
        b = b_ref[...]
        wd = w_ref.dtype

        # In-VMEM im2col: window tap k goes to lanes [k*E, (k+1)*E).  One
        # lane-dense slab, built from static slices -- no HBM round trip.
        taps = [emb[:, k:k + S_k, :] for k in range(max_fs)]
        x = jnp.concatenate(taps, axis=-1).reshape(TB * S_k, K)
        if K < D:
            x = jnp.concatenate(
                [x, jnp.zeros((TB * S_k, D - K), x.dtype)], axis=-1)

        # All filter sizes fused into ONE MXU matmul (bf16 in, f32 acc).
        conv = jnp.dot(x, w_ref[0], preferred_element_type=jnp.float32) + b[0:1]
        conv = jnp.maximum(conv, 0.0)

        # Zero positions past each filter's valid length (ReLU output >= 0, so
        # the max-pool result is unchanged), then max-pool over the sequence.
        conv = conv.reshape(TB, S_k, D) * mask_ref[...][None, :, :]
        pooled = jnp.max(conv, axis=1)                              # (TB, D)

        # dropout == identity (eval); BatchNorm folded into fc1 at pack time.
        h1 = jnp.maximum(
            jnp.dot(pooled.astype(wd), w_ref[1],
                    preferred_element_type=jnp.float32) + b[1:2], 0.0)
        h2 = jnp.maximum(
            jnp.dot(h1.astype(wd), w_ref[2],
                    preferred_element_type=jnp.float32) + b[2:3], 0.0)
        # TODO(synk): with output_dim << 128, fc3 could be a VPU mul-reduce
        # instead of a mostly-zero 128-wide matmul; kept on the MXU for clarity.
        out_ref[...] = jnp.dot(h2.astype(wd), w_ref[3],
                               preferred_element_type=jnp.float32) + b[3:4]

    return kernel


def pack_cnn_params(params, filter_sizes, seq_len, *, bn_eps=1e-5,
                    param_dtype=jnp.bfloat16):
    """One-time parameter packing (hoisted out of the per-call forward)."""
    E = params["embedding"].shape[1]
    n_filters = params["conv0_w"].shape[-1]
    n_fs = len(filter_sizes)
    max_fs = max(filter_sizes)
    cat_dim = n_fs * n_filters
    hidden1 = params["fc1_w"].shape[1]
    hidden2 = params["fc2_w"].shape[1]
    output_dim = params["fc3_w"].shape[1]

    assert seq_len >= max_fs, "sequence length must be >= max(filter_sizes)"

    K = max_fs * E
    # One common padded width so every matmul is (.., D) x (D, D), lane-dense.
    D = _round_up(max(K, cat_dim, hidden1, hidden2, output_dim, 128), 128)
    S_k = _round_up(seq_len, 8)                  # sequence positions in-kernel
    S_pad = _round_up(S_k + max_fs - 1, 8)       # padded input sequence length

    # Packed conv weight/bias: filter sizes stacked along N, dead taps zeroed.
    w_conv = jnp.zeros((D, D), jnp.float32)
    b_conv = jnp.zeros((1, D), jnp.float32)
    for i, fs in enumerate(filter_sizes):
        w_i = params[f"conv{i}_w"].reshape(fs * E, n_filters)      # (fs*E, F)
        c0 = i * n_filters
        w_conv = w_conv.at[:fs * E, c0:c0 + n_filters].set(w_i)
        b_conv = b_conv.at[:, c0:c0 + n_filters].set(params[f"conv{i}_b"])

    # Valid-position mask per output column (valid length = seq_len - fs + 1).
    cutoff = jnp.zeros((D,), jnp.int32)
    for i, fs in enumerate(filter_sizes):
        c0 = i * n_filters
        cutoff = cutoff.at[c0:c0 + n_filters].set(seq_len - fs + 1)
    mask = (jnp.arange(S_k)[:, None] < cutoff[None, :]).astype(jnp.float32)

    # Fold eval-mode BatchNorm1d into fc1 (in f32, then cast).
    s = params["bn_gamma"] * lax.rsqrt(params["bn_var"] + bn_eps)   # (1, cat)
    w1 = params["fc1_w"] * jnp.reshape(s, (-1, 1))                  # (cat, h1)
    b1 = params["fc1_b"] + (params["bn_beta"] - params["bn_mean"] * s) @ params["fc1_w"]

    def pad_w(w):
        return jnp.zeros((D, D), jnp.float32).at[:w.shape[0], :w.shape[1]].set(w)

    def pad_b(bb):
        return jnp.zeros((1, D), jnp.float32).at[:, :bb.shape[1]].set(bb)

    w_slab = jnp.stack(
        [w_conv, pad_w(w1), pad_w(params["fc2_w"]),
         pad_w(params["fc3_w"])]).astype(param_dtype)               # (4, D, D)
    b_slab = jnp.concatenate(
        [b_conv, pad_b(b1), pad_b(params["fc2_b"]), pad_b(params["fc3_b"])],
        axis=0)                                                     # (4, D) f32

    return {
        "embedding": params["embedding"].astype(param_dtype),
        "w_slab": w_slab,
        "b_slab": b_slab,
        "mask": mask,
        "meta": dict(E=E, K=K, D=D, S=seq_len, S_k=S_k, S_pad=S_pad,
                     max_fs=max_fs, output_dim=output_dim),
    }


def cnn_forward(text, packed):
    """text: int32 (S, B) token ids, matching the PyTorch forward signature."""
    m = packed["meta"]
    E, K, D = m["E"], m["K"], m["D"]
    S, S_k, S_pad, max_fs = m["S"], m["S_k"], m["S_pad"], m["max_fs"]
    output_dim = m["output_dim"]

    seq_len, B = text.shape
    assert seq_len == S, "pack_cnn_params was built for a different seq length"

    # Embedding gather in the packed (bf16) dtype: (B, S, E).
    embedded = jnp.take(packed["embedding"], jnp.transpose(text, (1, 0)), axis=0)

    # Batch tiling: whole batch as one block when small, 128-row tiles else.
    TB = B if B <= 128 else 128
    B_pad = _round_up(B, TB)
    emb_in = jnp.pad(embedded, ((0, B_pad - B), (0, S_pad - S), (0, 0)))

    esize = emb_in.dtype.itemsize
    wsize = packed["w_slab"].dtype.itemsize

    flops = 2 * B_pad * S_k * D * D + 3 * 2 * B_pad * D * D
    bytes_accessed = (emb_in.size * esize + packed["w_slab"].size * wsize
                      + packed["b_slab"].size * 4 + packed["mask"].size * 4
                      + B_pad * D * 4)

    # Per-grid-step VMEM (double-buffered blocks + resident params + temps),
    # with 2x headroom, clamped to the v6e/v7x default scoped limit.
    per_step = (2 * TB * S_pad * E * esize + 2 * TB * D * 4
                + 4 * D * D * wsize + 4 * D * 4 + S_k * D * 4
                + 4 * TB * S_k * D * 4)
    vmem_limit = int(min(max(2 * per_step, 4 << 20), 32 << 20))

    out = pl.pallas_call(
        _make_cnn_kernel(TB, S_k, max_fs, E, K, D),
        out_shape=jax.ShapeDtypeStruct((B_pad, D), jnp.float32),
        grid_spec=pltpu.PrefetchScalarGridSpec(
            num_scalar_prefetch=0,
            grid=(B_pad // TB,),
            in_specs=[
                pl.BlockSpec((TB, S_pad, E), lambda i: (i, 0, 0)),   # embedded
                pl.BlockSpec((4, D, D), lambda i: (0, 0, 0)),        # weights
                pl.BlockSpec((4, D), lambda i: (0, 0)),              # biases
                pl.BlockSpec((S_k, D), lambda i: (0, 0)),            # mask
            ],
            out_specs=pl.BlockSpec((TB, D), lambda i: (i, 0)),
        ),
        compiler_params=pltpu.CompilerParams(
            dimension_semantics=("parallel",),
            vmem_limit_bytes=vmem_limit),
        cost_estimate=pl.CostEstimate(flops=flops, transcendentals=0,
                                      bytes_accessed=bytes_accessed),
    )(emb_in, packed["w_slab"], packed["b_slab"], packed["mask"])

    # Slice padded batch rows / lanes back outside the kernel.
    return out[:B, :output_dim]


def init_params(key, vocab_size, embedding_dim, n_filters, filter_sizes,
                output_dim, pad_idx):
    """Deterministic synthetic parameters (PyTorch-default-like scales)."""
    keys = jax.random.split(key, 16)
    p = {}

    emb = 0.1 * jax.random.normal(keys[0], (vocab_size, embedding_dim), jnp.float32)
    emb = emb.at[pad_idx].set(0.0)              # padding_idx row is zero
    p["embedding"] = emb

    for i, fs in enumerate(filter_sizes):
        # PyTorch Conv2d weight: (F, 1, fs, E) -> kernel layout (fs, E, F)
        w = 0.1 * jax.random.normal(keys[1 + i], (n_filters, 1, fs, embedding_dim),
                                    jnp.float32)
        p[f"conv{i}_w"] = jnp.transpose(w[:, 0], (1, 2, 0))          # (fs, E, F)
        p[f"conv{i}_b"] = 0.01 * jnp.arange(n_filters, dtype=jnp.float32)[None, :]

    cat_dim = n_filters * len(filter_sizes)
    # BatchNorm1d defaults: gamma=1, beta=0, running_mean=0, running_var=1
    p["bn_gamma"] = jnp.ones((1, cat_dim), jnp.float32)
    p["bn_beta"] = jnp.zeros((1, cat_dim), jnp.float32)
    p["bn_mean"] = jnp.zeros((1, cat_dim), jnp.float32)
    p["bn_var"] = jnp.ones((1, cat_dim), jnp.float32)

    # Linear layers: stored as (in, out) for the kernel matmul
    p["fc1_w"] = 0.1 * jax.random.normal(keys[8], (cat_dim, 128), jnp.float32)
    p["fc1_b"] = 0.01 * jnp.ones((1, 128), jnp.float32)
    p["fc2_w"] = 0.1 * jax.random.normal(keys[9], (128, 128), jnp.float32)
    p["fc2_b"] = 0.01 * jnp.ones((1, 128), jnp.float32)
    p["fc3_w"] = 0.1 * jax.random.normal(keys[10], (128, output_dim), jnp.float32)
    p["fc3_b"] = 0.01 * jnp.ones((1, output_dim), jnp.float32)
    return p


if __name__ == "__main__":
    # Small, module-consistent shapes.
    vocab_size = 50
    embedding_dim = 32
    n_filters = 8
    filter_sizes = (2, 3, 4)
    output_dim = 4
    pad_idx = 0
    seq_len = 16
    batch = 2

    key = jax.random.PRNGKey(0)
    pkey, tkey = jax.random.split(key)
    params = init_params(pkey, vocab_size, embedding_dim, n_filters,
                         filter_sizes, output_dim, pad_idx)

    # One-time parameter packing (hoisted out of the per-call forward).
    packed = pack_cnn_params(params, filter_sizes, seq_len)

    # PyTorch forward takes text of shape (seq_len, batch).
    text = jax.random.randint(tkey, (seq_len, batch), 0, vocab_size, dtype=jnp.int32)

    fwd = jax.jit(functools.partial(cnn_forward, packed=packed))
    out = fwd(text)
    jax.block_until_ready(out)
    assert out.shape == (batch, output_dim)
    assert bool(jnp.all(jnp.isfinite(out)))
    print("KERNEL_OK")
</pallas_src>

<mosaic_0001>
module attributes {stable_mosaic.version = 11 : i64} {
  func.func @kernel(%arg0: i32, %arg1: memref<2x24x32xbf16, #tpu.memory_space<vmem>>, %arg2: memref<4x128x128xbf16, #tpu.memory_space<vmem>>, %arg3: memref<4x128xf32, #tpu.memory_space<vmem>>, %arg4: memref<16x128xf32, #tpu.memory_space<vmem>>, %arg5: memref<2x128xf32, #tpu.memory_space<vmem>>) attributes {dimension_semantics = [#tpu.dimension_semantics<parallel>], iteration_bounds = array<i64: 1>, scalar_prefetch = 0 : i64, scratch_operands = 0 : i64, tpu.core_type = #tpu.core_type<tc>, window_params = [{transform_indices = @transform_0, window_bounds = array<i64: 2, 24, 32>}, {pipeline_mode = #tpu.pipeline_mode<synchronous>, transform_indices = @transform_1, window_bounds = array<i64: 4, 128, 128>}, {pipeline_mode = #tpu.pipeline_mode<synchronous>, transform_indices = @transform_2, window_bounds = array<i64: 4, 128>}, {pipeline_mode = #tpu.pipeline_mode<synchronous>, transform_indices = @transform_3, window_bounds = array<i64: 16, 128>}, {transform_indices = @transform_4, window_bounds = array<i64: 2, 128>}]} {
    %c0 = arith.constant 0 : index
    %c0_0 = arith.constant 0 : index
    %c0_1 = arith.constant 0 : index
    %0 = vector.load %arg1[%c0, %c0_0, %c0_1] : memref<2x24x32xbf16, #tpu.memory_space<vmem>>, vector<2x24x32xbf16>
    %c0_2 = arith.constant 0 : index
    %c0_3 = arith.constant 0 : index
    %1 = vector.load %arg3[%c0_2, %c0_3] : memref<4x128xf32, #tpu.memory_space<vmem>>, vector<4x128xf32>
    %2 = vector.extract_strided_slice %0 {offsets = [0, 0, 0], sizes = [2, 16, 32], strides = [1, 1, 1]} : vector<2x24x32xbf16> to vector<2x16x32xbf16>
    %3 = vector.extract_strided_slice %0 {offsets = [0, 1, 0], sizes = [2, 16, 32], strides = [1, 1, 1]} : vector<2x24x32xbf16> to vector<2x16x32xbf16>
    %4 = vector.extract_strided_slice %0 {offsets = [0, 2, 0], sizes = [2, 16, 32], strides = [1, 1, 1]} : vector<2x24x32xbf16> to vector<2x16x32xbf16>
    %5 = vector.extract_strided_slice %0 {offsets = [0, 3, 0], sizes = [2, 16, 32], strides = [1, 1, 1]} : vector<2x24x32xbf16> to vector<2x16x32xbf16>
    %6 = tpu.concatenate %2, %3, %4, %5 in 2 : vector<2x16x32xbf16>, vector<2x16x32xbf16>, vector<2x16x32xbf16>, vector<2x16x32xbf16> -> vector<2x16x128xbf16>
    %7 = vector.shape_cast %6 : vector<2x16x128xbf16> to vector<32x128xbf16>
    %c0_4 = arith.constant 0 : index
    %c0_5 = arith.constant 0 : index
    %c0_6 = arith.constant 0 : index
    %8 = vector.load %arg2[%c0_4, %c0_5, %c0_6] : memref<4x128x128xbf16, #tpu.memory_space<vmem>>, vector<1x128x128xbf16>
    %9 = vector.shape_cast %8 : vector<1x128x128xbf16> to vector<128x128xbf16>
    %cst = arith.constant dense<0.000000e+00> : vector<32x128xf32>
    %10 = tpu.matmul %7, %9, %cst {dimension_numbers = #tpu.dot_dimension_numbers<[1], [0], [0], [1], [0, 0, 1, 1], [], []>} : vector<32x128xbf16>, vector<128x128xbf16>, vector<32x128xf32> -> vector<32x128xf32>
    %11 = vector.extract_strided_slice %1 {offsets = [0, 0], sizes = [1, 128], strides = [1, 1]} : vector<4x128xf32> to vector<1x128xf32>
    %12 = vector.broadcast %11 : vector<1x128xf32> to vector<32x128xf32>
    %13 = arith.addf %10, %12 : vector<32x128xf32>
    %cst_7 = arith.constant 0.000000e+00 : f32
    %14 = vector.broadcast %cst_7 : f32 to vector<32x128xf32>
    %15 = arith.maximumf %13, %14 : vector<32x128xf32>
    %16 = vector.shape_cast %15 : vector<32x128xf32> to vector<2x16x128xf32>
    %c0_8 = arith.constant 0 : index
    %c0_9 = arith.constant 0 : index
    %17 = vector.load %arg4[%c0_8, %c0_9] : memref<16x128xf32, #tpu.memory_space<vmem>>, vector<16x128xf32>
    %18 = vector.shape_cast %17 : vector<16x128xf32> to vector<1x16x128xf32>
    %19 = vector.broadcast %18 : vector<1x16x128xf32> to vector<2x16x128xf32>
    %20 = arith.mulf %16, %19 : vector<2x16x128xf32>
    %cst_10 = arith.constant dense<0xFF800000> : vector<2x128xf32>
    %21 = vector.multi_reduction <maximumf>, %20, %cst_10 [1] : vector<2x16x128xf32> to vector<2x128xf32>
    %22 = arith.truncf %21 : vector<2x128xf32> to vector<2x128xbf16>
    %c1 = arith.constant 1 : index
    %c0_11 = arith.constant 0 : index
    %c0_12 = arith.constant 0 : index
    %23 = vector.load %arg2[%c1, %c0_11, %c0_12] : memref<4x128x128xbf16, #tpu.memory_space<vmem>>, vector<1x128x128xbf16>
    %24 = vector.shape_cast %23 : vector<1x128x128xbf16> to vector<128x128xbf16>
    %cst_13 = arith.constant dense<0.000000e+00> : vector<2x128xf32>
    %25 = tpu.matmul %22, %24, %cst_13 {dimension_numbers = #tpu.dot_dimension_numbers<[1], [0], [0], [1], [0, 0, 1, 1], [], []>} : vector<2x128xbf16>, vector<128x128xbf16>, vector<2x128xf32> -> vector<2x128xf32>
    %26 = vector.extract_strided_slice %1 {offsets = [1, 0], sizes = [1, 128], strides = [1, 1]} : vector<4x128xf32> to vector<1x128xf32>
    %27 = vector.broadcast %26 : vector<1x128xf32> to vector<2x128xf32>
    %28 = arith.addf %25, %27 : vector<2x128xf32>
    %cst_14 = arith.constant 0.000000e+00 : f32
    %29 = vector.broadcast %cst_14 : f32 to vector<2x128xf32>
    %30 = arith.maximumf %28, %29 : vector<2x128xf32>
    %31 = arith.truncf %30 : vector<2x128xf32> to vector<2x128xbf16>
    %c2 = arith.constant 2 : index
    %c0_15 = arith.constant 0 : index
    %c0_16 = arith.constant 0 : index
    %32 = vector.load %arg2[%c2, %c0_15, %c0_16] : memref<4x128x128xbf16, #tpu.memory_space<vmem>>, vector<1x128x128xbf16>
    %33 = vector.shape_cast %32 : vector<1x128x128xbf16> to vector<128x128xbf16>
    %cst_17 = arith.constant dense<0.000000e+00> : vector<2x128xf32>
    %34 = tpu.matmul %31, %33, %cst_17 {dimension_numbers = #tpu.dot_dimension_numbers<[1], [0], [0], [1], [0, 0, 1, 1], [], []>} : vector<2x128xbf16>, vector<128x128xbf16>, vector<2x128xf32> -> vector<2x128xf32>
    %35 = vector.extract_strided_slice %1 {offsets = [2, 0], sizes = [1, 128], strides = [1, 1]} : vector<4x128xf32> to vector<1x128xf32>
    %36 = vector.broadcast %35 : vector<1x128xf32> to vector<2x128xf32>
    %37 = arith.addf %34, %36 : vector<2x128xf32>
    %cst_18 = arith.constant 0.000000e+00 : f32
    %38 = vector.broadcast %cst_18 : f32 to vector<2x128xf32>
    %39 = arith.maximumf %37, %38 : vector<2x128xf32>
    %40 = arith.truncf %39 : vector<2x128xf32> to vector<2x128xbf16>
    %c3 = arith.constant 3 : index
    %c0_19 = arith.constant 0 : index
    %c0_20 = arith.constant 0 : index
    %41 = vector.load %arg2[%c3, %c0_19, %c0_20] : memref<4x128x128xbf16, #tpu.memory_space<vmem>>, vector<1x128x128xbf16>
    %42 = vector.shape_cast %41 : vector<1x128x128xbf16> to vector<128x128xbf16>
    %cst_21 = arith.constant dense<0.000000e+00> : vector<2x128xf32>
    %43 = tpu.matmul %40, %42, %cst_21 {dimension_numbers = #tpu.dot_dimension_numbers<[1], [0], [0], [1], [0, 0, 1, 1], [], []>} : vector<2x128xbf16>, vector<128x128xbf16>, vector<2x128xf32> -> vector<2x128xf32>
    %44 = vector.extract_strided_slice %1 {offsets = [3, 0], sizes = [1, 128], strides = [1, 1]} : vector<4x128xf32> to vector<1x128xf32>
    %45 = vector.broadcast %44 : vector<1x128xf32> to vector<2x128xf32>
    %46 = arith.addf %43, %45 : vector<2x128xf32>
    %c0_22 = arith.constant 0 : index
    %c0_23 = arith.constant 0 : index
    %47 = vector.load %arg5[%c0_22, %c0_23] : memref<2x128xf32, #tpu.memory_space<vmem>>, vector<2x128xf32>
    tpu.vector_store %arg5[%c0_22, %c0_23], %46 {strides = array<i32>} : memref<2x128xf32, #tpu.memory_space<vmem>>, vector<2x128xf32>,
    return
  }
  func.func @transform_0(%arg0: i32) -> (i32, i32, i32) {
    %c0_i32 = arith.constant 0 : i32
    %c0_i32_0 = arith.constant 0 : i32
    %c0_i32_1 = arith.constant 0 : i32
    return %arg0, %c0_i32, %c0_i32_0 : i32, i32, i32
  }
  func.func @transform_1(%arg0: i32) -> (i32, i32, i32) {
    %c0_i32 = arith.constant 0 : i32
    %c0_i32_0 = arith.constant 0 : i32
    %c0_i32_1 = arith.constant 0 : i32
    %c0_i32_2 = arith.constant 0 : i32
    return %c0_i32, %c0_i32_0, %c0_i32_1 : i32, i32, i32
  }
  func.func @transform_2(%arg0: i32) -> (i32, i32) {
    %c0_i32 = arith.constant 0 : i32
    %c0_i32_0 = arith.constant 0 : i32
    %c0_i32_1 = arith.constant 0 : i32
    return %c0_i32, %c0_i32_0 : i32, i32
  }
  func.func @transform_3(%arg0: i32) -> (i32, i32) {
    %c0_i32 = arith.constant 0 : i32
    %c0_i32_0 = arith.constant 0 : i32
    %c0_i32_1 = arith.constant 0 : i32
    return %c0_i32, %c0_i32_0 : i32, i32
  }
  func.func @transform_4(%arg0: i32) -> (i32, i32) {
    %c0_i32 = arith.constant 0 : i32
    %c0_i32_0 = arith.constant 0 : i32
    return %arg0, %c0_i32 : i32, i32
  }
}

</mosaic_0001>

<bundles_post_ra>
// kernel: cnn_forward.1
= control target key start
LH: loop header
LB: loop body
LE: loop exit
PB: predicated region body
PF: predicated region fallthrough
CT: control target
= control target key end

     0   :  { %9 = vsyncpa [#allocation3], 0  ;;  %s1021_s0 = inlined_call_operand.vmem [shape: bf16[2,24,32], index: 0, kind: input, shape index: {}]   ;;  %s1022_s1 = inlined_call_operand.hbm [shape: bf16[4,128,128], index: 1, kind: input, shape index: {}]   ;;  %s1023_s2 = inlined_call_operand.vmem [shape: f32[4,128], index: 2, kind: input, shape index: {}]   ;;  %s1024_s3 = inlined_call_operand.vmem [shape: f32[16,128], index: 3, kind: input, shape index: {}]   ;;  %s1025_s4 = inlined_call_operand.hbm [shape: f32[2,128], index: 4, kind: output, shape index: {}]  }
   0x1   :  { %10 = vsyncpa [#allocation4], 0  ;;  %s879_s15 = smov [#allocation2]   ;;  %s831_s19 = scalar_lea.hbm %s1022_s1, 4096 }
   0x2   :  { %s18_s16 = sshll.u32 %s879_s15, 4  ;;  %p832_p0 = scmp.ne.s32.totalorder %s1022_s1, %s831_s19  ;;  %s19_s16 = int_to_ptr.vmem [resolvable:$true] %s18_s16 }
   0x3   :  { %p835_p1 = scmp.lt.u32.totalorder %s831_s19, %s1022_s1 }
   0x5   :  { %p837_p2 = pnand %p835_p1, %p832_p0 }
   0x7   :  { %840 = shalt.err (!%p837_p2)
}
   0x8   :  { %s841_s24 = scalar_lea.vmem %s19_s16, 4096  ;;  %p846_p4 = scmp.lt.s32.totalorder %s19_s16, %s19_s16 }
   0x9   :  { %p842_p3 = scmp.ne.s32.totalorder %s19_s16, %s841_s24  ;;  %p847_p5 = scmp.lt.s32.totalorder %s841_s24, %s841_s24 }
   0xb   :  { %p848_p6 = por %p847_p5, %p846_p4 }
   0xd   :  { %p849_p7 = pnand %p848_p6, %p842_p3 }
   0xf   :  { %852 = shalt.err (!%p849_p7)
}
  0x10   :  { %s880_s25 = smov 64   ;;  %s881_s26 = smov 4  }
  0x11   :  { %24 = dma.hbm_to_vmem [thread:$0]  %s1022_s1, 4096, %s19_s16, [#allocation3], %s880_s25, %s880_s25, %s881_s26  }
  0x12   :  { %875 = dma.done.wait [#allocation3], 4096  }
  0x13   :  { %876 = vsyncadd [#allocation3], 4294963200  ;;  %vm56_vm0 = vsmask.f32 7424  ;;  %v929_v0 = vld [vmem:[%s1021_s0] sm:$0xff]   ;;  %vm85_vm1 = vcmask 1046528  }
  0x14   :  { %v796_v1 = vld [vmem:[%s1021_s0 + $0x8] ss:$0 sps:$4 sm:$0xff]   ;;  %v937_v2 = vld [vmem:[%s1021_s0 + $0xc] sm:$0xff]   ;;  %vm96_vm2 = vsmask.f32 6400  ;;  %v86_v3 = vrot.slane %v929_v0, 1 }
  0x15   :  { %v87_v4 = vrot.slane %v796_v1, 1  ;;  %v58_v5 = vshrl.u32 %v929_v0, 16  ;;  %v60_v6 = vshll.u32 %v929_v0, 16  ;;  %v798_v7 = vld [vmem:[%s1021_s0 + $0x14] ss:$0 sps:$4 sm:$0xff]   ;;  %v65_v8 = vshll.u32 %v796_v1, 16 }
  0x16   :  { %v89_v9 = vrot.slane %v937_v2, 1  ;;  %v70_v10 = vshrl.u32 %v937_v2, 16  ;;  %v72_v11 = vshll.u32 %v937_v2, 16  ;;  %v90_v14 = vrot.slane %v798_v7, 1  ;;  %v799_v16 = vld [vmem:[#allocation2] sm:$0xff]   ;;  %v800_v25 = vld [vmem:[#allocation2 + $0x8] sm:$0xff]  }
  0x17   :  { %v88_v12 = vsel %vm85_vm1, %v86_v3, %v87_v4  ;;  %v62_v13 = vrot.slane %v60_v6, 1  ;;  %v77_v15 = vshll.u32 %v798_v7, 16  ;;  %v67_v17 = vrot.slane %v65_v8, 1  ;;  %707 = vmatprep.subr.bf16.mxu0 %v799_v16  ;;  %v801_v34 = vld [vmem:[#allocation2 + $0x10] sm:$0xff]   ;;  %s882_s0 = smov 32   ;;  %v802_v42 = vld [vmem:[#allocation2 + $0x18] sm:$0xff]  }
  0x18   :  { %92 = vrot.lane.b32.xlu1 %v88_v12, %s880_s25  ;;  %v74_v18 = vrot.slane %v72_v11, 1  ;;  %v106_v19 = vrot.slane %v70_v10, 1  ;;  %v107_v20 = vrot.slane %v72_v11, 2  ;;  %v91_v22 = vsel %vm85_vm1, %v89_v9, %v90_v14  ;;  %708 = vmatpush3.bf16.msra.mxu0 %v799_v16  ;;  %s883_s10 = smov 96   ;;  %v803_v45 = vld [vmem:[#allocation2 + $0x20] sm:$0xff]   ;;  %v804_v46 = vld [vmem:[#allocation2 + $0x28] sm:$0xff]  }
  0x19   :  { %v63_v21 = vor.u32 %v62_v13, %v58_v5  ;;  %v79_v23 = vrot.slane %v77_v15, 1  ;;  %v109_v24 = vshrl.u32 %v798_v7, 16  ;;  %v112_v28 = vrot.slane %v77_v15, 2  ;;  %709 = vmatprep.subr.bf16.mxu0 %v800_v25  ;;  %v805_v47 = vld [vmem:[#allocation2 + $0x30] sm:$0xff]   ;;  %v806_v48 = vld [vmem:[#allocation2 + $0x38] sm:$0xff]   ;;  %v807_v61 = vld [vmem:[#allocation2 + $0x40] sm:$0xff]  }
  0x1a   :  { %v75_v26 = vor.u32 %v74_v18, %v70_v10  ;;  %v108_v27 = vor.u32 %v107_v20, %v106_v19  ;;  %v97_v29 = vrot.slane %v58_v5, 1  ;;  %v98_v32 = vrot.slane %v60_v6, 2  ;;  %v808_v62 = vld [vmem:[#allocation2 + $0x48] sm:$0xff]   ;;  %v809_v63 = vld [vmem:[#allocation2 + $0x50] sm:$0xff]   ;;  %v814_v4 = vld [vmem:[#allocation2 + $0x78] sm:$0xff]  }
  0x1b   :  { %v68_v30 = vsel %vm56_vm0, %v63_v21, %v67_v17  ;;  %v111_v31 = vrot.slane %v109_v24, 1  ;;  %v100_v33 = vshrl.u32 %v796_v1, 16  ;;  %v103_v35 = vrot.slane %v65_v8, 2  ;;  %v811_v1 = vld [vmem:[#allocation2 + $0x60] sm:$0xff]   ;;  %v813_v3 = vld [vmem:[#allocation2 + $0x70] sm:$0xff]   ;;  %v816_v6 = vld [vmem:[#allocation2 + $0x88] sm:$0xff]  }
  0x1c   :  { %81 = vrot.lane.b32.xlu0 %v68_v30, %s882_s0  ;;  %94 = vrot.lane.b32.xlu1 %v91_v22, %s880_s25  ;;  %v80_v36 = vsel %vm56_vm0, %v75_v26, %v79_v23  ;;  %v99_v38 = vor.u32 %v98_v32, %v97_v29  ;;  %v884_v44 = vmov 0.0   ;;  %vm119_vm3 = vcmask 261120   ;;  %v815_v5 = vld [vmem:[#allocation2 + $0x80] sm:$0xff]   ;;  %v817_v7 = vld [vmem:[#allocation2 + $0x90] sm:$0xff]   ;;  %v818_v8 = vld [vmem:[#allocation2 + $0x98] sm:$0xff]  }
  0x1d   :  { %v113_v37 = vor.u32 %v112_v28, %v111_v31  ;;  %v102_v39 = vrot.slane %v100_v33, 1  ;;  %710 = vmatpush3.bf16.msra.mxu0 %v800_v25  ;;  %727 = vmatprep.subr.bf16.mxu1 %v884_v44  ;;  %vm124_vm4 = vcmask 523264   ;;  %vm129_vm5 = vcmask 785408   ;;  %v819_v9 = vld [vmem:[#allocation2 + $0xa0] sm:$0xff]   ;;  %v820_v10 = vld [vmem:[#allocation2 + $0xa8] sm:$0xff]  }
  0x1e   :  { %711 = vmatprep.subr.bf16.mxu0 %v801_v34  ;;  %728 = vmatpush3.bf16.msra.mxu1 %v807_v61  ;;  %vm885_vm6 = vmmov 0   ;;  %v152_v11 = vlaneseq  ;;  %v984_v14 = vld [vmem:[%s1023_s2] sm:$0xf]  ;;  %v258_v26 = vld [vmem:[%s1024_s3 + $0x8] sm:$0xff]  ;;  %vm304_vm7 = vcmask 1041409   ;;  %s886_s2 = smov [#allocation5]  }
  0x1f   :  { %v114_v40 = vsel %vm96_vm2, %v108_v27, %v113_v37  ;;  %v104_v41 = vor.u32 %v103_v35, %v102_v39  ;;  %729 = vmatprep.subr.bf16.mxu1 %v884_v44  ;;  %743 = vmatprep.mubr.msk.bf16.mxu1 %vm885_vm6, %v884_v44  ;;  %v257_v24 = vld [vmem:[%s1024_s3] sm:$0xff]  ;;  %s625_s3 = sshll.u32 %s886_s2, 4  ;;  %s626_s3 = int_to_ptr.vmem [resolvable:$true] %s625_s3 }
  0x20   :  { %83 = vrot.lane.b32.xlu0 %v80_v36, %s882_s0  ;;  %117 = vrot.lane.b32.xlu1 %v114_v40, %s883_s10  ;;  %v978_v12 = vshrl.u32 %v152_v11, 7  ;;  %v827_v61 = vld [vmem:[#allocation2 + $0xe0] sm:$0xff]   ;;  %s853_s17 = scalar_lea.vmem %s626_s3, 32  ;;  %p858_p9 = scmp.lt.s32.totalorder %s626_s3, %s626_s3 }
  0x21   :  { %v105_v43 = vsel %vm96_vm2, %v99_v38, %v104_v41  ;;  %712 = vmatpush3.bf16.msra.mxu0 %v801_v34  ;;  %p854_p8 = scmp.ne.s32.totalorder %s626_s3, %s853_s17  ;;  %p859_p10 = scmp.lt.s32.totalorder %s853_s17, %s853_s17 }
  0x22   :  { %713 = vmatprep.subr.bf16.mxu0 %v802_v42  ;;  %730 = vmatpush3.bf16.msra.mxu1 %v808_v62  ;;  %v154_v13 = vsub.s32 0, %v978_v12  ;;  %v828_v62 = vld [vmem:[#allocation2 + $0xe8] sm:$0xff]  }
  0x23   :  { %731 = vmatprep.subr.bf16.mxu1 %v884_v44  ;;  %p860_p11 = por %p859_p10, %p858_p9 }
  0x24   :  { %115 = vrot.lane.b32.xlu0 %v105_v43, %s883_s10  ;;  %v155_v15 = vrot.slane %v984_v14, %v154_v13 }
  0x25   :  { %714 = vmatpush3.bf16.msra.mxu0 %v802_v42  ;;  %p861_p12 = pnand %p860_p11, %p854_p8 }
  0x26   :  { %715 = vmatprep.subr.bf16.mxu0 %v803_v45  ;;  %732 = vmatpush3.bf16.msra.mxu1 %v809_v63  ;;  %v298_v63 = vsub.s32 1, %v978_v12 }
  0x27   :  { %733 = vmatprep.subr.bf16.mxu1 %v884_v44 }
  0x29   :  { %716 = vmatpush3.bf16.msra.mxu0 %v803_v45 }
  0x2a   :  { %717 = vmatprep.subr.bf16.mxu0 %v804_v46 }
  0x2d   :  { %718 = vmatpush3.bf16.msra.mxu0 %v804_v46 }
  0x2e   :  { %719 = vmatprep.subr.bf16.mxu0 %v805_v47 }
  0x31   :  { %720 = vmatpush3.bf16.msra.mxu0 %v805_v47 }
  0x32   :  { %721 = vmatprep.subr.bf16.mxu0 %v806_v48 }
  0x35   :  { %722 = vmatpush3.bf16.msra.mxu0 %v806_v48 }
  0x36   :  { %747 = vmatprep.subr.bf16.mxu0 %v884_v44 }
  0x8a   :  { %v93_v49 = vpop.permute.xlu1 %92 }
  0x8e   :  { %v82_v50 = vpop.permute.xlu0 %81  ;;  %v95_v51 = vpop.permute.xlu1 %94 }
  0x8f   :  { %v121_v53 = vsel %vm119_vm3, %v929_v0, %v82_v50  ;;  %v810_v0 = vld [vmem:[#allocation2 + $0x58] sm:$0xff]  }
  0x90   :  { %v126_v58 = vsel %vm124_vm4, %v121_v53, %v93_v49  ;;  %734 = vmatpush3.bf16.msra.mxu1 %v810_v0  ;;  %v299_v0 = vrot.slane %v984_v14, %v298_v63 }
  0x91   :  { %735 = vmatprep.subr.bf16.mxu1 %v884_v44 }
  0x92   :  { %v84_v52 = vpop.permute.xlu0 %83  ;;  %v118_v55 = vpop.permute.xlu1 %117 }
  0x93   :  { %v123_v54 = vsel %vm119_vm3, %v937_v2, %v84_v52  ;;  %v812_v2 = vld [vmem:[#allocation2 + $0x68] sm:$0xff]  }
  0x94   :  { %v128_v56 = vsel %vm124_vm4, %v123_v54, %v95_v51  ;;  %736 = vmatpush3.bf16.msra.mxu1 %v811_v1 }
  0x95   :  { %v134_v60 = vsel %vm129_vm5, %v128_v56, %v118_v55  ;;  %737 = vmatprep.subr.bf16.mxu1 %v884_v44  ;;  %v821_v55 = vld [vmem:[#allocation2 + $0xb0] sm:$0xff]   ;;  %v822_v56 = vld [vmem:[#allocation2 + $0xb8] sm:$0xff]  }
  0x96   :  { %v116_v57 = vpop.permute.xlu0 %115 }
  0x97   :  { %v131_v59 = vsel %vm129_vm5, %v126_v58, %v116_v57  ;;  %v823_v57 = vld [vmem:[#allocation2 + $0xc0] sm:$0xff]   ;;  %v824_v58 = vld [vmem:[#allocation2 + $0xc8] sm:$0xff]  }
  0x98   :  { %723 = vmatprep.mubr.bf16.mxu0 %v131_v59  ;;  %738 = vmatpush3.bf16.msra.mxu1 %v812_v2  ;;  %v825_v59 = vld [vmem:[#allocation2 + $0xd0] sm:$0xff]  }
  0x99   :  { %724 = vmatmul.mubr.bf16.vlgmr.msra.gmra.mrb[0].mxu0 %v134_v60  ;;  %739 = vmatprep.subr.bf16.mxu1 %v884_v44  ;;  %v826_v60 = vld [vmem:[#allocation2 + $0xd8] sm:$0xff]  }
  0x9a   :  { %763 = vmatprep.mubr.msk.bf16.mxu0 %vm885_vm6, %v884_v44  ;;  %748 = vmatpush3.bf16.msra.mxu0 %v815_v5 }
  0x9b   :  { %749 = vmatprep.subr.bf16.mxu0 %v884_v44 }
  0x9c   :  { %740 = vmatpush3.bf16.msra.mxu1 %v813_v3 }
  0x9d   :  { %741 = vmatprep.subr.bf16.mxu1 %v884_v44 }
  0x9e   :  { %750 = vmatpush3.bf16.msra.mxu0 %v816_v6 }
  0x9f   :  { %751 = vmatprep.subr.bf16.mxu0 %v884_v44 }
  0xa0   :  { %742 = vmatpush3.bf16.msra.mxu1 %v814_v4 }
  0xa1   :  { %767 = vmatprep.subr.bf16.mxu1 %v884_v44 }
  0xa2   :  { %752 = vmatpush3.bf16.msra.mxu0 %v817_v7 }
  0xa3   :  { %753 = vmatprep.subr.bf16.mxu0 %v884_v44 }
  0xa6   :  { %754 = vmatpush3.bf16.msra.mxu0 %v818_v8  ;;  %v829_v8 = vld [vmem:[#allocation2 + $0xf0] sm:$0xff]  }
  0xa7   :  { %755 = vmatprep.subr.bf16.mxu0 %v884_v44 }
  0xaa   :  { %756 = vmatpush3.bf16.msra.mxu0 %v819_v9  ;;  %v830_v9 = vld [vmem:[#allocation2 + $0xf8] sm:$0xff]  }
  0xab   :  { %757 = vmatprep.subr.bf16.mxu0 %v884_v44 }
  0xae   :  { %758 = vmatpush3.bf16.msra.mxu0 %v820_v10  ;;  %v417_v10 = vsub.s32 2, %v978_v12 }
  0xaf   :  { %759 = vmatprep.subr.bf16.mxu0 %v884_v44 }
  0xb0   :  { %v418_v11 = vrot.slane %v984_v14, %v417_v10 }
  0xb2   :  { %760 = vmatpush3.bf16.msra.mxu0 %v821_v55 }
  0xb3   :  { %761 = vmatprep.subr.bf16.mxu0 %v884_v44 }
  0xb6   :  { %762 = vmatpush3.bf16.msra.mxu0 %v822_v56 }
 0x16c   :  { %v725_v16 = vpop.f32.mrb[0].mxu0 }
 0x16d   :  { %v247_v17 = vadd.f32 %v725_v16, %v155_v15  ;;  %v238_v18 = vpop.f32.mrb[1].mxu0 }
 0x16e   :  { %v239_v19 = vadd.f32 %v238_v18, %v155_v15  ;;  %v726_v20 = vpop.f32.mrb[2].mxu0 }
 0x16f   :  { %v255_v21 = vmax.f32 %v247_v17, 0.0  ;;  %v250_v22 = vadd.f32 %v726_v20, %v155_v15  ;;  %v241_v23 = vpop.f32.mrb[3].mxu0 }
 0x170   :  { %v253_v25 = vmax.f32 %v239_v19, 0.0  ;;  %v242_v27 = vadd.f32 %v241_v23, %v155_v15 }
 0x171   :  { %v256_v28 = vmax.f32 %v250_v22, 0.0  ;;  %v261_v30 = vmul.f32 %v257_v24, %v255_v21  ;;  %v528_v21 = vsub.s32 3, %v978_v12 }
 0x172   :  { %v254_v29 = vmax.f32 %v242_v27, 0.0  ;;  %v259_v32 = vmul.f32 %v257_v24, %v253_v25 }
 0x173   :  { %v262_v31 = vmul.f32 %v258_v26, %v256_v28  ;;  %v529_v22 = vrot.slane %v984_v14, %v528_v21 }
 0x174   :  { %v260_v33 = vmul.f32 %v258_v26, %v254_v29 }
 0x175   :  { %v270_v34 = vmax.f32 %v261_v30, %v262_v31 }
 0x176   :  { %v263_v35 = vmax.f32 %v259_v32, %v260_v33 }
 0x177   :  { %v271_v36 = vrot.slane %v270_v34, 4 }
 0x178   :  { %v264_v37 = vrot.slane %v263_v35, 4 }
 0x179   :  { %v272_v38 = vmax.f32 %v270_v34, %v271_v36 }
 0x17a   :  { %v265_v39 = vmax.f32 %v263_v35, %v264_v37 }
 0x17b   :  { %v273_v40 = vrot.slane %v272_v38, 2 }
 0x17c   :  { %v266_v41 = vrot.slane %v265_v39, 2 }
 0x17d   :  { %v274_v42 = vmax.f32 %v272_v38, %v273_v40 }
 0x17e   :  { %v267_v43 = vmax.f32 %v265_v39, %v266_v41 }
 0x17f   :  { %v275_v45 = vrot.slane %v274_v42, 1 }
 0x180   :  { %v268_v46 = vrot.slane %v267_v43, 1 }
 0x181   :  { %v276_v47 = vmax.f32 %v274_v42, %v275_v45 }
 0x182   :  { %v269_v48 = vmax.f32 %v267_v43, %v268_v46 }
 0x183   :  { %v278_v49 = vpack.c.bf16 %v276_v47, %v276_v47 }
 0x184   :  { %v277_v50 = vpack.c.bf16 %v269_v48, %v269_v48 }
 0x185   :  { %v303_v51 = vunpack.c.l.b16 %v278_v49 }
 0x186   :  { %v302_v52 = vunpack.c.l.b16 %v277_v50 }
 0x188   :  { %v305_v53 = vsel %vm304_vm7, %v303_v51, %v302_v52 }
 0x189   :  { %v306_v54 = vpack.c.b16 %v305_v53, %v305_v53 }
 0x18b   :  { %744 = vmatmul.mubr.bf16.vlgmr.msra.gmra.mrb[0].mxu1 %v306_v54 }
 0x18c   :  { %783 = vmatprep.mubr.msk.bf16.mxu1 %vm885_vm6, %v884_v44  ;;  %768 = vmatpush3.bf16.msra.mxu1 %v823_v57 }
 0x18d   :  { %769 = vmatprep.subr.bf16.mxu1 %v884_v44 }
 0x190   :  { %770 = vmatpush3.bf16.msra.mxu1 %v824_v58 }
 0x191   :  { %771 = vmatprep.subr.bf16.mxu1 %v884_v44 }
 0x194   :  { %772 = vmatpush3.bf16.msra.mxu1 %v825_v59 }
 0x195   :  { %773 = vmatprep.subr.bf16.mxu1 %v884_v44 }
 0x198   :  { %774 = vmatpush3.bf16.msra.mxu1 %v826_v60 }
 0x199   :  { %775 = vmatprep.subr.bf16.mxu1 %v884_v44 }
 0x19c   :  { %776 = vmatpush3.bf16.msra.mxu1 %v827_v61 }
 0x19d   :  { %777 = vmatprep.subr.bf16.mxu1 %v884_v44 }
 0x1a0   :  { %778 = vmatpush3.bf16.msra.mxu1 %v828_v62 }
 0x1a1   :  { %779 = vmatprep.subr.bf16.mxu1 %v884_v44 }
 0x1a4   :  { %780 = vmatpush3.bf16.msra.mxu1 %v829_v8 }
 0x1a5   :  { %781 = vmatprep.subr.bf16.mxu1 %v884_v44 }
 0x1a8   :  { %782 = vmatpush3.bf16.msra.mxu1 %v830_v9 }
 0x25e   :  { %v390_v1 = vpop.f32.mrb[0].mxu1 }
 0x25f   :  { %v391_v2 = vadd.f32 %v390_v1, %v299_v0  ;;  %v745_v3 = vpop.f32.mrb[1].mxu1 }
 0x260   :  { %v393_v4 = vpop.f32.mrb[2].mxu1 }
 0x261   :  { %v396_v5 = vmax.f32 %v391_v2, 0.0  ;;  %v746_v6 = vpop.f32.mrb[3].mxu1 }
 0x263   :  { %v397_v7 = vpack.c.bf16 %v396_v5, %v396_v5 }
 0x265   :  { %764 = vmatmul.mubr.bf16.vlgmr.msra.gmra.mrb[4].mxu0 %v397_v7 }
 0x338   :  { %v501_v13 = vpop.f32.mrb[4].mxu0 }
 0x339   :  { %v502_v15 = vadd.f32 %v501_v13, %v418_v11  ;;  %v765_v16 = vpop.f32.mrb[5].mxu0 }
 0x33a   :  { %v504_v17 = vpop.f32.mrb[6].mxu0 }
 0x33b   :  { %v507_v18 = vmax.f32 %v502_v15, 0.0  ;;  %v766_v19 = vpop.f32.mrb[7].mxu0 }
 0x33d   :  { %v508_v20 = vpack.c.bf16 %v507_v18, %v507_v18 }
 0x33f   :  { %784 = vmatmul.mubr.bf16.vlgmr.msra.gmra.mrb[4].mxu1 %v508_v20 }
 0x412   :  { %v612_v44 = vpop.f32.mrb[4].mxu1 }
 0x413   :  { %v613_v23 = vadd.f32 %v612_v44, %v529_v22  ;;  %v785_v24 = vpop.f32.mrb[5].mxu1 }
 0x414   :  { %v615_v25 = vpop.f32.mrb[6].mxu1 }
 0x415   :  { %618 = vst [vmem:[#allocation5] sm:$0x3] %v613_v23  ;;  %v786_v26 = vpop.f32.mrb[7].mxu1 }
 0x416   :  { %864 = shalt.err (!%p861_p12)
}
 0x417   :  { %s865_s20 = scalar_lea.hbm %s1025_s4, 32 }
 0x418   :  { %p866_p13 = scmp.ne.s32.totalorder %s1025_s4, %s865_s20  ;;  %p869_p0 = scmp.lt.u32.totalorder %s865_s20, %s1025_s4 }
 0x41a   :  { %p871_p1 = pnand %p869_p0, %p866_p13 }
 0x41c   :  { %874 = shalt.err (!%p871_p1)
}
 0x41d   :  { %628 = dma.vmem_to_hbm [thread:$0]  %s626_s3, 32, %s1025_s4, [#allocation4]  }
 0x41e   :  { %877 = dma.done.wait [#allocation4], 32  }
 0x41f   :  { %878 = vsyncadd [#allocation4], 4294967264 }
 0x420   :  { %632 = vsyncpa [#allocation3], 1 }
 0x421   :  { %633 = vsyncpa [#allocation4], 1 }

</bundles_post_ra>
